<compile_context>
chip_gen: v6e
topology: v6e:2x2x1
jax: 0.10.0
libtpu: 0.0.40
codegen_flags: <defaults>
</compile_context>

<pallas_src>
import jax
import jax.numpy as jnp
from jax.experimental import pallas as pl
from jax.experimental.pallas import tpu as pltpu

RASF_CHANNEL = 32
NEG_SLOPE = 0.02


def generator_kernel(x_ref,
                     w1_ref,
                     w2_ref, b2_ref, w3_ref, b3_ref,
                     w4_ref, b4_ref, w5_ref, b5_ref,
                     w6_ref, b6_ref,
                     o_ref):
    # x_ref: (C_in_pad, tn) tile, channels on sublanes, points on lanes.
    # w*_ref: (C_out, C_in) bf16; b*_ref: (C_out, 1) f32.
    compute_dtype = x_ref.dtype

    def leaky(z):
        # Exactly equivalent to where(z > 0, z, slope*z) for 0 < slope < 1.
        return jnp.maximum(z, NEG_SLOPE * z)

    # Layer 1: bias is folded into W1 via the constant-1 input channel,
    # so there is no separate bias add here.
    z = jnp.dot(w1_ref[...], x_ref[...], preferred_element_type=jnp.float32)
    h = leaky(z).astype(compute_dtype)

    def layer(w_ref, b_ref, h):
        z = jnp.dot(w_ref[...], h, preferred_element_type=jnp.float32)
        z = z + b_ref[...]                 # (C_out, tn) f32
        return leaky(z).astype(compute_dtype)

    h = layer(w2_ref, b2_ref, h)
    h = layer(w3_ref, b3_ref, h)
    h = layer(w4_ref, b4_ref, h)
    h = layer(w5_ref, b5_ref, h)

    # Final layer: no activation, f32 output, (3, tn) lane-dense store.
    z = jnp.dot(w6_ref[...], h, preferred_element_type=jnp.float32) + b6_ref[...]
    o_ref[...] = z.astype(o_ref.dtype)


def generator_forward(x_ncl, params, *, tn=1024, compute_dtype=jnp.bfloat16):
    """x_ncl: (B, C_in, N) -> (B, 3, N) float32, matching the PyTorch module."""
    B, C_in, N = x_ncl.shape
    c_out_true = params[-1][0].shape[0]   # 3
    n_layers = len(params)

    # Pad input channels to a multiple of 16 (bf16 sublane packing), reserving
    # at least one extra channel that is set to 1.0 and carries layer-1's bias.
    C_in_pad = ((C_in + 1 + 15) // 16) * 16
    ones_ch = C_in                        # first pad channel holds the 1.0s

    # Lane tile: multiple of 128, clamped for small inputs.  When B == 1 keep
    # at least 2 grid steps so both v7x TensorCores get grid points.
    n_aligned = pl.cdiv(N, 128) * 128
    tn_eff = min(tn, n_aligned)
    if B == 1 and n_aligned >= 256:
        tn_eff = min(tn_eff, (n_aligned // 2 // 128) * 128)
    tn_eff = max(128, (tn_eff // 128) * 128)
    N_pad = pl.cdiv(N, tn_eff) * tn_eff

    # Pad input (zeros in pad channels / pad points), insert the ones channel,
    # cast to the bf16 compute dtype.
    x_p = jnp.pad(x_ncl.astype(jnp.float32),
                  ((0, 0), (0, C_in_pad - C_in), (0, N_pad - N)))
    x_p = x_p.at[:, ones_ch, :].set(1.0)
    x_p = x_p.astype(compute_dtype)

    # Prepare weights/biases.  W stored (C_out, C_in) (PyTorch conv layout).
    ws, bs = [], []
    for idx, (w, b) in enumerate(params):
        c_out, c_in = w.shape
        w = w.astype(jnp.float32)
        b = b.astype(jnp.float32)
        if idx == 0:
            # Pad W1's input dim and fold the bias into the ones-channel column.
            w_p = jnp.zeros((c_out, C_in_pad), jnp.float32)
            w_p = w_p.at[:, :c_in].set(w).at[:, ones_ch].set(b)
            ws.append(w_p.astype(compute_dtype))
            bs.append(None)
        else:
            ws.append(w.astype(compute_dtype))
            bs.append(b.reshape(c_out, 1))   # f32 bias, added after f32 accum

    # Grid-invariant full-array blocks for weights/biases.
    # TODO(synk): pipeline_mode=pl.Buffered(1) would drop the dead second
    # buffer (~0.5 MB) for these invariant operands; left at the default
    # double-buffering for portability.
    def invariant_spec(shape):
        return pl.BlockSpec(shape, lambda b, j: (0, 0))

    in_specs = [pl.BlockSpec((None, C_in_pad, tn_eff), lambda b, j: (b, 0, j))]
    flat_args = [x_p]
    for idx in range(n_layers):
        in_specs.append(invariant_spec(ws[idx].shape))
        flat_args.append(ws[idx])
        if bs[idx] is not None:
            in_specs.append(invariant_spec(bs[idx].shape))
            flat_args.append(bs[idx])

    # Advisory cost estimate for XLA's scheduler around the custom call.
    macs_per_point = sum(int(w.shape[0]) * int(w.shape[1]) for w, _ in params)
    bytes_accessed = (int(x_p.size) * 2                      # bf16 input read
                      + B * c_out_true * N_pad * 4           # f32 output write
                      + sum(int(w.size) * 2 for w in ws)     # bf16 weights
                      + sum(int(bv.size) * 4 for bv in bs if bv is not None))
    cost = pl.CostEstimate(flops=2 * macs_per_point * B * N_pad,
                           transcendentals=0,
                           bytes_accessed=bytes_accessed)

    out_p = pl.pallas_call(
        generator_kernel,
        out_shape=jax.ShapeDtypeStruct((B, c_out_true, N_pad), jnp.float32),
        grid_spec=pltpu.PrefetchScalarGridSpec(
            num_scalar_prefetch=0,
            grid=(B, N_pad // tn_eff),
            in_specs=in_specs,
            out_specs=pl.BlockSpec((None, c_out_true, tn_eff),
                                   lambda b, j: (b, 0, j)),
        ),
        compiler_params=pltpu.CompilerParams(
            dimension_semantics=("parallel", "parallel"),
            vmem_limit_bytes=32 * 1024 * 1024),
        cost_estimate=cost,
    )(*flat_args)

    # Padded point columns are nonzero (biases propagate) -> must slice N.
    return out_p[:, :, :N]


def init_params(key, rasf_channel=RASF_CHANNEL, dtype=jnp.float32):
    dims = [
        rasf_channel + 3,
        rasf_channel * 2,
        rasf_channel * 4,
        rasf_channel * 8,
        rasf_channel * 4,
        rasf_channel * 2,
        3,
    ]
    params = []
    for idx in range(6):
        c_in, c_out = dims[idx], dims[idx + 1]
        key, kw, kb = jax.random.split(key, 3)
        # PyTorch Conv1d weight (out, in, 1) squeezed -> (out, in); fan_in = c_in.
        bound = 1.0 / (c_in ** 0.5)
        w = jax.random.uniform(kw, (c_out, c_in), dtype, -bound, bound)
        b = jax.random.uniform(kb, (c_out,), dtype, -bound, bound)
        params.append((w, b))
    return params


def reference_forward(x_ncl, params):
    """Plain-JAX f32 reference of the same math (for sanity check)."""
    h = x_ncl.astype(jnp.float32)  # (B, C, N)
    for layer, (w, b) in enumerate(params):
        h = jnp.einsum("oc,bcn->bon", w, h) + b[None, :, None]
        if layer < len(params) - 1:
            h = jnp.where(h > 0, h, NEG_SLOPE * h)
    return h


if __name__ == "__main__":
    key = jax.random.PRNGKey(0)
    k_params, k_x = jax.random.split(key)

    params = init_params(k_params)

    B, N = 2, 16
    C_in = RASF_CHANNEL + 3  # 35
    x = jax.random.normal(k_x, (B, C_in, N), dtype=jnp.float32)

    out = jax.block_until_ready(generator_forward(x, params))
    ref = jax.block_until_ready(reference_forward(x, params))

    assert out.shape == (B, 3, N), out.shape
    assert out.dtype == jnp.float32, out.dtype
    # bf16 matmul operands with f32 accumulation -> compare with loose tolerance.
    rel_err = float(jnp.max(jnp.abs(out - ref)) / (jnp.max(jnp.abs(ref)) + 1e-6))
    assert rel_err < 5e-2, f"mismatch vs reference, rel_err={rel_err}"

    print("KERNEL_OK")
</pallas_src>

<mosaic_0001>
module attributes {stable_mosaic.version = 11 : i64} {
  func.func @generator_kernel(%arg0: i32, %arg1: i32, %arg2: memref<1x48x128xbf16, #tpu.memory_space<vmem>>, %arg3: memref<64x48xbf16, #tpu.memory_space<vmem>>, %arg4: memref<128x64xbf16, #tpu.memory_space<vmem>>, %arg5: memref<128x1xf32, #tpu.memory_space<vmem>>, %arg6: memref<256x128xbf16, #tpu.memory_space<vmem>>, %arg7: memref<256x1xf32, #tpu.memory_space<vmem>>, %arg8: memref<128x256xbf16, #tpu.memory_space<vmem>>, %arg9: memref<128x1xf32, #tpu.memory_space<vmem>>, %arg10: memref<64x128xbf16, #tpu.memory_space<vmem>>, %arg11: memref<64x1xf32, #tpu.memory_space<vmem>>, %arg12: memref<3x64xbf16, #tpu.memory_space<vmem>>, %arg13: memref<3x1xf32, #tpu.memory_space<vmem>>, %arg14: memref<1x3x128xf32, #tpu.memory_space<vmem>>) attributes {dimension_semantics = [#tpu.dimension_semantics<parallel>, #tpu.dimension_semantics<parallel>], iteration_bounds = array<i64: 2, 1>, scalar_prefetch = 0 : i64, scratch_operands = 0 : i64, tpu.core_type = #tpu.core_type<tc>, window_params = [{transform_indices = @transform_0, window_bounds = array<i64: 1, 48, 128>}, {pipeline_mode = #tpu.pipeline_mode<synchronous>, transform_indices = @transform_1, window_bounds = array<i64: 64, 48>}, {pipeline_mode = #tpu.pipeline_mode<synchronous>, transform_indices = @transform_2, window_bounds = array<i64: 128, 64>}, {pipeline_mode = #tpu.pipeline_mode<synchronous>, transform_indices = @transform_3, window_bounds = array<i64: 128, 1>}, {pipeline_mode = #tpu.pipeline_mode<synchronous>, transform_indices = @transform_4, window_bounds = array<i64: 256, 128>}, {pipeline_mode = #tpu.pipeline_mode<synchronous>, transform_indices = @transform_5, window_bounds = array<i64: 256, 1>}, {pipeline_mode = #tpu.pipeline_mode<synchronous>, transform_indices = @transform_6, window_bounds = array<i64: 128, 256>}, {pipeline_mode = #tpu.pipeline_mode<synchronous>, transform_indices = @transform_7, window_bounds = array<i64: 128, 1>}, {pipeline_mode = #tpu.pipeline_mode<synchronous>, transform_indices = @transform_8, window_bounds = array<i64: 64, 128>}, {pipeline_mode = #tpu.pipeline_mode<synchronous>, transform_indices = @transform_9, window_bounds = array<i64: 64, 1>}, {pipeline_mode = #tpu.pipeline_mode<synchronous>, transform_indices = @transform_10, window_bounds = array<i64: 3, 64>}, {pipeline_mode = #tpu.pipeline_mode<synchronous>, transform_indices = @transform_11, window_bounds = array<i64: 3, 1>}, {transform_indices = @transform_12, window_bounds = array<i64: 1, 3, 128>}]} {
    %c0 = arith.constant 0 : index
    %c0_0 = arith.constant 0 : index
    %0 = vector.load %arg3[%c0, %c0_0] : memref<64x48xbf16, #tpu.memory_space<vmem>>, vector<64x48xbf16>
    %c0_1 = arith.constant 0 : index
    %c0_2 = arith.constant 0 : index
    %c0_3 = arith.constant 0 : index
    %1 = vector.load %arg2[%c0_1, %c0_2, %c0_3] : memref<1x48x128xbf16, #tpu.memory_space<vmem>>, vector<1x48x128xbf16>
    %2 = vector.shape_cast %1 : vector<1x48x128xbf16> to vector<48x128xbf16>
    %cst = arith.constant dense<0.000000e+00> : vector<64x128xf32>
    %3 = tpu.matmul %0, %2, %cst {dimension_numbers = #tpu.dot_dimension_numbers<[1], [0], [0], [1], [0, 0, 1, 1], [], []>} : vector<64x48xbf16>, vector<48x128xbf16>, vector<64x128xf32> -> vector<64x128xf32>
    %cst_4 = arith.constant 2.000000e-02 : f32
    %4 = vector.broadcast %cst_4 : f32 to vector<64x128xf32>
    %5 = arith.mulf %4, %3 : vector<64x128xf32>
    %6 = arith.maximumf %3, %5 : vector<64x128xf32>
    %7 = arith.truncf %6 : vector<64x128xf32> to vector<64x128xbf16>
    %c0_5 = arith.constant 0 : index
    %c0_6 = arith.constant 0 : index
    %8 = vector.load %arg4[%c0_5, %c0_6] : memref<128x64xbf16, #tpu.memory_space<vmem>>, vector<128x64xbf16>
    %cst_7 = arith.constant dense<0.000000e+00> : vector<128x128xf32>
    %9 = tpu.matmul %8, %7, %cst_7 {dimension_numbers = #tpu.dot_dimension_numbers<[1], [0], [0], [1], [0, 0, 1, 1], [], []>} : vector<128x64xbf16>, vector<64x128xbf16>, vector<128x128xf32> -> vector<128x128xf32>
    %c0_8 = arith.constant 0 : index
    %c0_9 = arith.constant 0 : index
    %10 = vector.load %arg5[%c0_8, %c0_9] : memref<128x1xf32, #tpu.memory_space<vmem>>, vector<128x1xf32>
    %11 = vector.broadcast %10 : vector<128x1xf32> to vector<128x128xf32>
    %12 = arith.addf %9, %11 : vector<128x128xf32>
    %cst_10 = arith.constant 2.000000e-02 : f32
    %13 = vector.broadcast %cst_10 : f32 to vector<128x128xf32>
    %14 = arith.mulf %13, %12 : vector<128x128xf32>
    %15 = arith.maximumf %12, %14 : vector<128x128xf32>
    %16 = arith.truncf %15 : vector<128x128xf32> to vector<128x128xbf16>
    %c0_11 = arith.constant 0 : index
    %c0_12 = arith.constant 0 : index
    %17 = vector.load %arg6[%c0_11, %c0_12] : memref<256x128xbf16, #tpu.memory_space<vmem>>, vector<256x128xbf16>
    %cst_13 = arith.constant dense<0.000000e+00> : vector<256x128xf32>
    %18 = tpu.matmul %17, %16, %cst_13 {dimension_numbers = #tpu.dot_dimension_numbers<[1], [0], [0], [1], [0, 0, 1, 1], [], []>} : vector<256x128xbf16>, vector<128x128xbf16>, vector<256x128xf32> -> vector<256x128xf32>
    %c0_14 = arith.constant 0 : index
    %c0_15 = arith.constant 0 : index
    %19 = vector.load %arg7[%c0_14, %c0_15] : memref<256x1xf32, #tpu.memory_space<vmem>>, vector<256x1xf32>
    %20 = vector.broadcast %19 : vector<256x1xf32> to vector<256x128xf32>
    %21 = arith.addf %18, %20 : vector<256x128xf32>
    %cst_16 = arith.constant 2.000000e-02 : f32
    %22 = vector.broadcast %cst_16 : f32 to vector<256x128xf32>
    %23 = arith.mulf %22, %21 : vector<256x128xf32>
    %24 = arith.maximumf %21, %23 : vector<256x128xf32>
    %25 = arith.truncf %24 : vector<256x128xf32> to vector<256x128xbf16>
    %c0_17 = arith.constant 0 : index
    %c0_18 = arith.constant 0 : index
    %26 = vector.load %arg8[%c0_17, %c0_18] : memref<128x256xbf16, #tpu.memory_space<vmem>>, vector<128x256xbf16>
    %cst_19 = arith.constant dense<0.000000e+00> : vector<128x128xf32>
    %27 = tpu.matmul %26, %25, %cst_19 {dimension_numbers = #tpu.dot_dimension_numbers<[1], [0], [0], [1], [0, 0, 1, 1], [], []>} : vector<128x256xbf16>, vector<256x128xbf16>, vector<128x128xf32> -> vector<128x128xf32>
    %c0_20 = arith.constant 0 : index
    %c0_21 = arith.constant 0 : index
    %28 = vector.load %arg9[%c0_20, %c0_21] : memref<128x1xf32, #tpu.memory_space<vmem>>, vector<128x1xf32>
    %29 = vector.broadcast %28 : vector<128x1xf32> to vector<128x128xf32>
    %30 = arith.addf %27, %29 : vector<128x128xf32>
    %cst_22 = arith.constant 2.000000e-02 : f32
    %31 = vector.broadcast %cst_22 : f32 to vector<128x128xf32>
    %32 = arith.mulf %31, %30 : vector<128x128xf32>
    %33 = arith.maximumf %30, %32 : vector<128x128xf32>
    %34 = arith.truncf %33 : vector<128x128xf32> to vector<128x128xbf16>
    %c0_23 = arith.constant 0 : index
    %c0_24 = arith.constant 0 : index
    %35 = vector.load %arg10[%c0_23, %c0_24] : memref<64x128xbf16, #tpu.memory_space<vmem>>, vector<64x128xbf16>
    %cst_25 = arith.constant dense<0.000000e+00> : vector<64x128xf32>
    %36 = tpu.matmul %35, %34, %cst_25 {dimension_numbers = #tpu.dot_dimension_numbers<[1], [0], [0], [1], [0, 0, 1, 1], [], []>} : vector<64x128xbf16>, vector<128x128xbf16>, vector<64x128xf32> -> vector<64x128xf32>
    %c0_26 = arith.constant 0 : index
    %c0_27 = arith.constant 0 : index
    %37 = vector.load %arg11[%c0_26, %c0_27] : memref<64x1xf32, #tpu.memory_space<vmem>>, vector<64x1xf32>
    %38 = vector.broadcast %37 : vector<64x1xf32> to vector<64x128xf32>
    %39 = arith.addf %36, %38 : vector<64x128xf32>
    %cst_28 = arith.constant 2.000000e-02 : f32
    %40 = vector.broadcast %cst_28 : f32 to vector<64x128xf32>
    %41 = arith.mulf %40, %39 : vector<64x128xf32>
    %42 = arith.maximumf %39, %41 : vector<64x128xf32>
    %43 = arith.truncf %42 : vector<64x128xf32> to vector<64x128xbf16>
    %c0_29 = arith.constant 0 : index
    %c0_30 = arith.constant 0 : index
    %44 = vector.load %arg12[%c0_29, %c0_30] : memref<3x64xbf16, #tpu.memory_space<vmem>>, vector<3x64xbf16>
    %cst_31 = arith.constant dense<0.000000e+00> : vector<3x128xf32>
    %45 = tpu.matmul %44, %43, %cst_31 {dimension_numbers = #tpu.dot_dimension_numbers<[1], [0], [0], [1], [0, 0, 1, 1], [], []>} : vector<3x64xbf16>, vector<64x128xbf16>, vector<3x128xf32> -> vector<3x128xf32>
    %c0_32 = arith.constant 0 : index
    %c0_33 = arith.constant 0 : index
    %46 = vector.load %arg13[%c0_32, %c0_33] : memref<3x1xf32, #tpu.memory_space<vmem>>, vector<3x1xf32>
    %47 = vector.broadcast %46 : vector<3x1xf32> to vector<3x128xf32>
    %48 = arith.addf %45, %47 : vector<3x128xf32>
    %c0_34 = arith.constant 0 : index
    %c0_35 = arith.constant 0 : index
    %c0_36 = arith.constant 0 : index
    %49 = vector.load %arg14[%c0_34, %c0_35, %c0_36] : memref<1x3x128xf32, #tpu.memory_space<vmem>>, vector<1x3x128xf32>
    %50 = vector.shape_cast %49 : vector<1x3x128xf32> to vector<3x128xf32>
    %51 = vector.shape_cast %48 : vector<3x128xf32> to vector<1x3x128xf32>
    tpu.vector_store %arg14[%c0_34, %c0_35, %c0_36], %51 {strides = array<i32>} : memref<1x3x128xf32, #tpu.memory_space<vmem>>, vector<1x3x128xf32>,
    return
  }
  func.func @transform_0(%arg0: i32, %arg1: i32) -> (i32, i32, i32) {
    %c0_i32 = arith.constant 0 : i32
    %c0_i32_0 = arith.constant 0 : i32
    return %arg0, %c0_i32, %arg1 : i32, i32, i32
  }
  func.func @transform_1(%arg0: i32, %arg1: i32) -> (i32, i32) {
    %c0_i32 = arith.constant 0 : i32
    %c0_i32_0 = arith.constant 0 : i32
    %c0_i32_1 = arith.constant 0 : i32
    return %c0_i32, %c0_i32_0 : i32, i32
  }
  func.func @transform_2(%arg0: i32, %arg1: i32) -> (i32, i32) {
    %c0_i32 = arith.constant 0 : i32
    %c0_i32_0 = arith.constant 0 : i32
    %c0_i32_1 = arith.constant 0 : i32
    return %c0_i32, %c0_i32_0 : i32, i32
  }
  func.func @transform_3(%arg0: i32, %arg1: i32) -> (i32, i32) {
    %c0_i32 = arith.constant 0 : i32
    %c0_i32_0 = arith.constant 0 : i32
    %c0_i32_1 = arith.constant 0 : i32
    return %c0_i32, %c0_i32_0 : i32, i32
  }
  func.func @transform_4(%arg0: i32, %arg1: i32) -> (i32, i32) {
    %c0_i32 = arith.constant 0 : i32
    %c0_i32_0 = arith.constant 0 : i32
    %c0_i32_1 = arith.constant 0 : i32
    return %c0_i32, %c0_i32_0 : i32, i32
  }
  func.func @transform_5(%arg0: i32, %arg1: i32) -> (i32, i32) {
    %c0_i32 = arith.constant 0 : i32
    %c0_i32_0 = arith.constant 0 : i32
    %c0_i32_1 = arith.constant 0 : i32
    return %c0_i32, %c0_i32_0 : i32, i32
  }
  func.func @transform_6(%arg0: i32, %arg1: i32) -> (i32, i32) {
    %c0_i32 = arith.constant 0 : i32
    %c0_i32_0 = arith.constant 0 : i32
    %c0_i32_1 = arith.constant 0 : i32
    return %c0_i32, %c0_i32_0 : i32, i32
  }
  func.func @transform_7(%arg0: i32, %arg1: i32) -> (i32, i32) {
    %c0_i32 = arith.constant 0 : i32
    %c0_i32_0 = arith.constant 0 : i32
    %c0_i32_1 = arith.constant 0 : i32
    return %c0_i32, %c0_i32_0 : i32, i32
  }
  func.func @transform_8(%arg0: i32, %arg1: i32) -> (i32, i32) {
    %c0_i32 = arith.constant 0 : i32
    %c0_i32_0 = arith.constant 0 : i32
    %c0_i32_1 = arith.constant 0 : i32
    return %c0_i32, %c0_i32_0 : i32, i32
  }
  func.func @transform_9(%arg0: i32, %arg1: i32) -> (i32, i32) {
    %c0_i32 = arith.constant 0 : i32
    %c0_i32_0 = arith.constant 0 : i32
    %c0_i32_1 = arith.constant 0 : i32
    return %c0_i32, %c0_i32_0 : i32, i32
  }
  func.func @transform_10(%arg0: i32, %arg1: i32) -> (i32, i32) {
    %c0_i32 = arith.constant 0 : i32
    %c0_i32_0 = arith.constant 0 : i32
    %c0_i32_1 = arith.constant 0 : i32
    return %c0_i32, %c0_i32_0 : i32, i32
  }
  func.func @transform_11(%arg0: i32, %arg1: i32) -> (i32, i32) {
    %c0_i32 = arith.constant 0 : i32
    %c0_i32_0 = arith.constant 0 : i32
    %c0_i32_1 = arith.constant 0 : i32
    return %c0_i32, %c0_i32_0 : i32, i32
  }
  func.func @transform_12(%arg0: i32, %arg1: i32) -> (i32, i32, i32) {
    %c0_i32 = arith.constant 0 : i32
    %c0_i32_0 = arith.constant 0 : i32
    return %arg0, %c0_i32, %arg1 : i32, i32, i32
  }
}

</mosaic_0001>

<bundles_post_ra>
// kernel: tpu_custom_call.1
= control target key start
LH: loop header
LB: loop body
LE: loop exit
PB: predicated region body
PF: predicated region fallthrough
CT: control target
= control target key end

     0   :  { %s2591_s21 = smov 0   ;;  %s2593_s22 = smov 0   ;;  %s3171_s0 = inlined_call_operand.vmem [shape: bf16[2,48,128], index: 0, kind: input, shape index: {}]   ;;  %s3172_s1 = inlined_call_operand.vmem [shape: bf16[64,48], index: 1, kind: input, shape index: {}]   ;;  %s3173_s2 = inlined_call_operand.vmem [shape: bf16[128,64], index: 2, kind: input, shape index: {}]   ;;  %s3174_s3 = inlined_call_operand.vmem [shape: f32[128,1], index: 3, kind: input, shape index: {}]   ;;  %s3175_s4 = inlined_call_operand.vmem [shape: bf16[256,128], index: 4, kind: input, shape index: {}]   ;;  %s3176_s5 = inlined_call_operand.vmem [shape: f32[256,1], index: 5, kind: input, shape index: {}]   ;;  %s3177_s6 = inlined_call_operand.vmem [shape: bf16[128,256], index: 6, kind: input, shape index: {}]   ;;  %s3178_s7 = inlined_call_operand.vmem [shape: f32[128,1], index: 7, kind: input, shape index: {}]   ;;  %s3179_s8 = inlined_call_operand.vmem [shape: bf16[64,128], index: 8, kind: input, shape index: {}]   ;;  %s3180_s9 = inlined_call_operand.vmem [shape: f32[64,1], index: 9, kind: input, shape index: {}]   ;;  %s3181_s10 = inlined_call_operand.vmem [shape: bf16[3,64], index: 10, kind: input, shape index: {}]   ;;  %s3182_s11 = inlined_call_operand.vmem [shape: f32[3,1], index: 11, kind: input, shape index: {}]   ;;  %s3183_s12 = inlined_call_operand.vmem [shape: f32[2,3,128], index: 12, kind: output, shape index: {}]  }
   0x1   :  { %s2595_s23 = smov 0  }
   0x2 LB: > { %s34_s24 = sadd.s32 1, %s2517_s22  ;;  %p2095_p0 = scmp.ge.s32.totalorder %s2521_s23, 1  ;;  %s2521_s23 = sphi %s2595_s23, %s22_s23   ;;  %s2517_s22 = sphi %s2593_s22, %s3185_s22   ;;  %s2513_s21 = sphi %s2591_s21, %s3184_s21  }
   0x3   : > { %p36_p1 = scmp.ge.s32.totalorder %s34_s24, 2  ;;  %p381_p2 = scmp.lt.s32.totalorder %s2521_s23, 3 }
   0x5   : > { %s3187_s24 = smov (%p36_p1, %s34_s24), 0  ;;  %p382_p3 = pnand %p2095_p0, %p381_p2 }
   0x6   : > { %p428_p4 = scmp.lt.s32.totalorder (!%p382_p3), %s2513_s21, 1 }
   0x7   : > { %385 = sbr.rel (%p382_p3) target bundleno = 1534 (0x5fe), region = 68 }
   0xc   : > { %v2443_v0 = vld [vmem:[%s3172_s1] sm:$0xff]   ;;  %vm496_vm0 = vcmask 392192   ;;  %s3189_s21 = smov (!%p428_p4, %s2513_s21), 1  ;;  %v2523_v1 = vmov 0   ;;  %v624_v2 = vld [vmem:[%s3174_s3 + $0x70] sm:$0xff]  ;;  %v625_v4 = vld [vmem:[%s3174_s3 + $0x78] sm:$0xff] }
   0xd   : > { %2294 = vmatprep.mubr.msk.bf16.mxu0 %vm496_vm0, %v2443_v0  ;;  %s2410_s27 = smul.u32 24, %s3189_s21  ;;  %2438 = vset.pattern.permute.xlu0 %v2523_v1  ;;  %v622_v3 = vld [vmem:[%s3174_s3 + $0x60] sm:$0xff]  ;;  %v623_v5 = vld [vmem:[%s3174_s3 + $0x68] sm:$0xff]  ;;  %v620_v8 = vld [vmem:[%s3174_s3 + $0x50] sm:$0xff]  ;;  %vm746_vm1 = vcmask 523264   ;;  %vm2525_vm2 = vmmov 0  }
   0xe   : > { %2439 = vset.pattern.permute.xlu1 %v2523_v1  ;;  %698 = vperm.xlu0 %2438, %v624_v2   ;;  %v621_v10 = vld [vmem:[%s3174_s3 + $0x58] sm:$0xff]  ;;  %v618_v11 = vld [vmem:[%s3174_s3 + $0x40] sm:$0xff]  ;;  %v2444_v12 = vld [vmem:[%s3172_s1 + $0x8] sm:$0xff]   ;;  %s2097_s17 = sshll.u32 %s3189_s21, 2 }
   0xf   : > { %688 = vperm.xlu1 %2439, %v622_v3   ;;  %s435_s16 = scalar_lea.vmem %s3171_s0, %s2410_s27  ;;  %v2445_v13 = vld [vmem:[%s3172_s1 + $0x10] sm:$0xff]   ;;  %v2446_v15 = vld [vmem:[%s3172_s1 + $0x18] sm:$0xff]   ;;  %v619_v16 = vld [vmem:[%s3174_s3 + $0x48] sm:$0xff]  ;;  %s442_s20 = scalar_lea.vmem %s3183_s12, %s2097_s17 }
  0x10   : > { %v2440_v6 = vld [vmem:[%s435_s16 + $0x10] sm:$0xff]   ;;  %v2441_v7 = vld [vmem:[%s435_s16 + $0x8] sm:$0xff]   ;;  %v2442_v9 = vld [vmem:[%s435_s16] sm:$0xff]  }
  0x11   : > { %2288 = vmatprep.subr.bf16.mxu0 %v2440_v6  ;;  %v616_v14 = vld [vmem:[%s3174_s3 + $0x30] sm:$0xff]  ;;  %v614_v17 = vld [vmem:[%s3174_s3 + $0x20] sm:$0xff]  ;;  %v617_v18 = vld [vmem:[%s3174_s3 + $0x38] sm:$0xff] }
  0x12   : > { %703 = vperm.xlu0 %2438, %v625_v4   ;;  %2289 = vmatpush3.bf16.msra.mxu0 %v2440_v6  ;;  %v612_v19 = vld [vmem:[%s3174_s3 + $0x10] sm:$0xff]  ;;  %v615_v20 = vld [vmem:[%s3174_s3 + $0x28] sm:$0xff]  ;;  %v610_v21 = vld [vmem:[%s3174_s3] sm:$0xff] }
  0x13   : > { %693 = vperm.xlu1 %2439, %v623_v5   ;;  %2290 = vmatprep.subr.bf16.mxu0 %v2441_v7  ;;  %v613_v22 = vld [vmem:[%s3174_s3 + $0x18] sm:$0xff]  ;;  %v970_v23 = vld [vmem:[%s3176_s5 + $0xf0] sm:$0xff]  ;;  %v611_v24 = vld [vmem:[%s3174_s3 + $0x8] sm:$0xff] }
  0x14   : > { %v954_v25 = vld [vmem:[%s3176_s5 + $0x70] sm:$0xff]  ;;  %v971_v26 = vld [vmem:[%s3176_s5 + $0xf8] sm:$0xff]  ;;  %v968_v27 = vld [vmem:[%s3176_s5 + $0xe0] sm:$0xff] }
  0x15   : > { %v955_v28 = vld [vmem:[%s3176_s5 + $0x78] sm:$0xff]  ;;  %v952_v29 = vld [vmem:[%s3176_s5 + $0x60] sm:$0xff]  ;;  %v969_v30 = vld [vmem:[%s3176_s5 + $0xe8] sm:$0xff] }
  0x16   : > { %678 = vperm.xlu0 %2438, %v620_v8   ;;  %2291 = vmatpush3.bf16.msra.mxu0 %v2441_v7  ;;  %v966_v31 = vld [vmem:[%s3176_s5 + $0xd0] sm:$0xff]  ;;  %v2447_v32 = vld [vmem:[%s3173_s2] sm:$0xff]   ;;  %v953_v33 = vld [vmem:[%s3176_s5 + $0x68] sm:$0xff] }
  0x17   : > { %683 = vperm.xlu1 %2439, %v621_v10   ;;  %2292 = vmatprep.subr.bf16.mxu0 %v2442_v9  ;;  %v950_v34 = vld [vmem:[%s3176_s5 + $0x50] sm:$0xff]  ;;  %v967_v35 = vld [vmem:[%s3176_s5 + $0xd8] sm:$0xff]  ;;  %v964_v36 = vld [vmem:[%s3176_s5 + $0xc0] sm:$0xff] }
  0x18   : > { %2310 = vmatprep.mubr.msk.bf16.mxu1 %vm746_vm1, %v2447_v32  ;;  %v951_v37 = vld [vmem:[%s3176_s5 + $0x58] sm:$0xff]  ;;  %v948_v38 = vld [vmem:[%s3176_s5 + $0x40] sm:$0xff]  ;;  %v965_v39 = vld [vmem:[%s3176_s5 + $0xc8] sm:$0xff] }
  0x19   : > { %v962_v40 = vld [vmem:[%s3176_s5 + $0xb0] sm:$0xff]  ;;  %v949_v41 = vld [vmem:[%s3176_s5 + $0x48] sm:$0xff]  ;;  %v963_v43 = vld [vmem:[%s3176_s5 + $0xb8] sm:$0xff] }
  0x1a   : > { %668 = vperm.xlu0 %2438, %v618_v11   ;;  %2293 = vmatpush3.bf16.msra.mxu0 %v2442_v9  ;;  %v946_v42 = vld [vmem:[%s3176_s5 + $0x30] sm:$0xff]  ;;  %v960_v44 = vld [vmem:[%s3176_s5 + $0xa0] sm:$0xff]  ;;  %v947_v45 = vld [vmem:[%s3176_s5 + $0x38] sm:$0xff] }
  0x1b   : > { %673 = vperm.xlu1 %2439, %v619_v16   ;;  %v944_v46 = vld [vmem:[%s3176_s5 + $0x20] sm:$0xff]  ;;  %v961_v47 = vld [vmem:[%s3176_s5 + $0xa8] sm:$0xff]  ;;  %v958_v48 = vld [vmem:[%s3176_s5 + $0x90] sm:$0xff] }
  0x1c   : > { %v945_v49 = vld [vmem:[%s3176_s5 + $0x28] sm:$0xff]  ;;  %v942_v50 = vld [vmem:[%s3176_s5 + $0x10] sm:$0xff]  ;;  %v959_v51 = vld [vmem:[%s3176_s5 + $0x98] sm:$0xff] }
  0x1d   : > { %2295 = vmatmul.mubr.msk.bf16.vlgmr.msra.gmra.mxu0 %vm496_vm0, %v2444_v12  ;;  %v956_v52 = vld [vmem:[%s3176_s5 + $0x80] sm:$0xff]  ;;  %v943_v53 = vld [vmem:[%s3176_s5 + $0x18] sm:$0xff]  ;;  %v957_v55 = vld [vmem:[%s3176_s5 + $0x88] sm:$0xff] }
  0x1e   : > { %658 = vperm.xlu0 %2438, %v616_v14   ;;  %2298 = vmatprep.mubr.msk.bf16.mxu0 %vm496_vm0, %v2445_v13  ;;  %v940_v54 = vld [vmem:[%s3176_s5] sm:$0xff]  ;;  %v1499_v56 = vld [vmem:[%s3178_s7 + $0x70] sm:$0xff]  ;;  %v941_v57 = vld [vmem:[%s3176_s5 + $0x8] sm:$0xff] }
  0x1f   : > { %663 = vperm.xlu1 %2439, %v617_v18   ;;  %v1497_v58 = vld [vmem:[%s3178_s7 + $0x60] sm:$0xff]  ;;  %v1500_v59 = vld [vmem:[%s3178_s7 + $0x78] sm:$0xff]  ;;  %v1495_v60 = vld [vmem:[%s3178_s7 + $0x50] sm:$0xff] }
  0x20   : > { %v1498_v61 = vld [vmem:[%s3178_s7 + $0x68] sm:$0xff]  ;;  %v1493_v62 = vld [vmem:[%s3178_s7 + $0x40] sm:$0xff]  ;;  %v1496_v63 = vld [vmem:[%s3178_s7 + $0x58] sm:$0xff] }
  0x21   : > { %v1491_v0 = vld [vmem:[%s3178_s7 + $0x30] sm:$0xff]  ;;  %v1494_v1 = vld [vmem:[%s3178_s7 + $0x48] sm:$0xff]  ;;  %v1489_v2 = vld [vmem:[%s3178_s7 + $0x20] sm:$0xff] }
  0x22   : > { %648 = vperm.xlu0 %2438, %v614_v17   ;;  %v1492_v3 = vld [vmem:[%s3178_s7 + $0x38] sm:$0xff]  ;;  %v1487_v4 = vld [vmem:[%s3178_s7 + $0x10] sm:$0xff]  ;;  %v1490_v5 = vld [vmem:[%s3178_s7 + $0x28] sm:$0xff] }
  0x23   : > { %653 = vperm.xlu1 %2439, %v615_v20   ;;  %v1485_v6 = vld [vmem:[%s3178_s7] sm:$0xff]  ;;  %v1488_v7 = vld [vmem:[%s3178_s7 + $0x18] sm:$0xff]  ;;  %v1812_v8 = vld [vmem:[%s3180_s9 + $0x30] sm:$0xff] }
  0x24   : > { %v1486_v9 = vld [vmem:[%s3178_s7 + $0x8] sm:$0xff]  ;;  %v1810_v10 = vld [vmem:[%s3180_s9 + $0x20] sm:$0xff]  ;;  %v1813_v11 = vld [vmem:[%s3180_s9 + $0x38] sm:$0xff] }
  0x25   : > { %2299 = vmatmul.mubr.msk.bf16.gmra.mxu0 %vm496_vm0, %v2446_v15  ;;  %v1808_v12 = vld [vmem:[%s3180_s9 + $0x10] sm:$0xff]  ;;  %v1811_v13 = vld [vmem:[%s3180_s9 + $0x28] sm:$0xff]  ;;  %v1806_v14 = vld [vmem:[%s3180_s9] sm:$0xff] }
  0x26   : > { %638 = vperm.xlu0 %2438, %v612_v19   ;;  %v1809_v15 = vld [vmem:[%s3180_s9 + $0x18] sm:$0xff]  ;;  %v1964_v16 = vld [vmem:[%s3182_s11] sm:$0x7]  ;;  %v1807_v18 = vld [vmem:[%s3180_s9 + $0x8] sm:$0xff] }
  0x27   : > { %643 = vperm.xlu1 %2439, %v613_v22  }
  0x2a   : > { %628 = vperm.xlu0 %2438, %v610_v21  }
  0x2b   : > { %633 = vperm.xlu1 %2439, %v611_v24  }
  0x2e   : > { %1124 = vperm.xlu0 %2438, %v970_v23  }
  0x2f   : > { %1129 = vperm.xlu1 %2439, %v971_v26  }
  0x32   : > { %1044 = vperm.xlu0 %2438, %v954_v25  }
  0x33   : > { %1049 = vperm.xlu1 %2439, %v955_v28  }
  0x36   : > { %1114 = vperm.xlu0 %2438, %v968_v27  }
  0x37   : > { %1119 = vperm.xlu1 %2439, %v969_v30  }
  0x3a   : > { %1034 = vperm.xlu0 %2438, %v952_v29  }
  0x3b   : > { %1039 = vperm.xlu1 %2439, %v953_v33  }
  0x3e   : > { %1104 = vperm.xlu0 %2438, %v966_v31  }
  0x3f   : > { %1109 = vperm.xlu1 %2439, %v967_v35  }
  0x42   : > { %1024 = vperm.xlu0 %2438, %v950_v34  }
  0x43   : > { %1029 = vperm.xlu1 %2439, %v951_v37  }
  0x46   : > { %1094 = vperm.xlu0 %2438, %v964_v36  }
  0x47   : > { %1099 = vperm.xlu1 %2439, %v965_v39  }
  0x4a   : > { %1014 = vperm.xlu0 %2438, %v948_v38  }
  0x4b   : > { %1019 = vperm.xlu1 %2439, %v949_v41  }
  0x4e   : > { %1084 = vperm.xlu0 %2438, %v962_v40  }
  0x4f   : > { %1089 = vperm.xlu1 %2439, %v963_v43  }
  0x52   : > { %1004 = vperm.xlu0 %2438, %v946_v42  }
  0x53   : > { %1009 = vperm.xlu1 %2439, %v947_v45  }
  0x56   : > { %1074 = vperm.xlu0 %2438, %v960_v44  }
  0x57   : > { %1079 = vperm.xlu1 %2439, %v961_v47   ;;  %v2449_v47 = vld [vmem:[%s3173_s2 + $0x10] sm:$0xff]  }
  0x5a   : > { %994 = vperm.xlu0 %2438, %v944_v46   ;;  %v2448_v46 = vld [vmem:[%s3173_s2 + $0x8] sm:$0xff]  }
  0x5b   : > { %999 = vperm.xlu1 %2439, %v945_v49   ;;  %v2451_v49 = vld [vmem:[%s3173_s2 + $0x20] sm:$0xff]  }
  0x5e   : > { %1064 = vperm.xlu0 %2438, %v958_v48   ;;  %v2450_v48 = vld [vmem:[%s3173_s2 + $0x18] sm:$0xff]  }
  0x5f   : > { %1069 = vperm.xlu1 %2439, %v959_v51   ;;  %v2453_v51 = vld [vmem:[%s3173_s2 + $0x30] sm:$0xff]  }
  0x62   : > { %984 = vperm.xlu0 %2438, %v942_v50   ;;  %v2452_v50 = vld [vmem:[%s3173_s2 + $0x28] sm:$0xff]  }
  0x63   : > { %989 = vperm.xlu1 %2439, %v943_v53   ;;  %v2455_v53 = vld [vmem:[%s3175_s4] sm:$0xff]  }
  0x64   : > { %2342 = vmatprep.mubr.bf16.mxu0 %v2455_v53 }
  0x66   : > { %1054 = vperm.xlu0 %2438, %v956_v52   ;;  %v2454_v52 = vld [vmem:[%s3173_s2 + $0x38] sm:$0xff]  }
  0x67   : > { %1059 = vperm.xlu1 %2439, %v957_v55  }
  0x6a   : > { %974 = vperm.xlu0 %2438, %v940_v54  }
  0x6b   : > { %979 = vperm.xlu1 %2439, %v941_v57  }
  0x6e   : > { %1573 = vperm.xlu0 %2438, %v1499_v56  }
  0x6f   : > { %1578 = vperm.xlu1 %2439, %v1500_v59  }
  0x72   : > { %1563 = vperm.xlu0 %2438, %v1497_v58  }
  0x73   : > { %1568 = vperm.xlu1 %2439, %v1498_v61  }
  0x76   : > { %1553 = vperm.xlu0 %2438, %v1495_v60  }
  0x77   : > { %1558 = vperm.xlu1 %2439, %v1496_v63  }
  0x7a   : > { %1543 = vperm.xlu0 %2438, %v1493_v62  }
  0x7b   : > { %1548 = vperm.xlu1 %2439, %v1494_v1  }
  0x7e   : > { %1533 = vperm.xlu0 %2438, %v1491_v0  }
  0x7f   : > { %1538 = vperm.xlu1 %2439, %v1492_v3  }
  0x82   : > { %1523 = vperm.xlu0 %2438, %v1489_v2  }
  0x83   : > { %1528 = vperm.xlu1 %2439, %v1490_v5  }
  0x86   : > { %1513 = vperm.xlu0 %2438, %v1487_v4  }
  0x87   : > { %1518 = vperm.xlu1 %2439, %v1488_v7  }
  0x89   : > { %v699_v59 = vpop.permute.xlu0 %698 }
  0x8a   : > { %1503 = vperm.xlu0 %2438, %v1485_v6   ;;  %v689_v57 = vpop.permute.xlu1 %688 }
  0x8b   : > { %1508 = vperm.xlu1 %2439, %v1486_v9  }
  0x8d   : > { %v704_v0 = vpop.permute.xlu0 %703 }
  0x8e   : > { %1846 = vperm.xlu0 %2438, %v1812_v8   ;;  %v694_v62 = vpop.permute.xlu1 %693 }
  0x8f   : > { %1851 = vperm.xlu1 %2439, %v1813_v11  }
  0x91   : > { %v679_v5 = vpop.permute.xlu0 %678 }
  0x92   : > { %1836 = vperm.xlu0 %2438, %v1810_v10   ;;  %v684_v3 = vpop.permute.xlu1 %683 }
  0x93   : > { %1841 = vperm.xlu1 %2439, %v1811_v13  }
  0x95   : > { %v669_v11 = vpop.permute.xlu0 %668 }
  0x96   : > { %1826 = vperm.xlu0 %2438, %v1808_v12   ;;  %v674_v8 = vpop.permute.xlu1 %673 }
  0x97   : > { %1831 = vperm.xlu1 %2439, %v1809_v15  }
  0x9a   : > { %1816 = vperm.xlu0 %2438, %v1806_v14  }
  0x9b   : > { %1821 = vperm.xlu1 %2439, %v1807_v18   ;;  %v664_v18 = vpop.permute.xlu1 %663 }
  0x9e   : > { %1967 = vperm.xlu0 %2438, %v1964_v16  }
  0xdd   : > { %v2296_v17 = vpop.f32.mrf.mxu0 }
  0xde   : > { %v576_v33 = vmul.f32 0.02, %v2296_v17 }
  0xdf   : > { %v543_v19 = vpop.f32.mrf.mxu0 }
  0xe0   : > { %v584_v40 = vmax.f32 %v2296_v17, %v576_v33  ;;  %v574_v41 = vmul.f32 0.02, %v543_v19 }
  0xe1   : > { %v2297_v20 = vpop.f32.mrf.mxu0 }
  0xe2   : > { %v577_v29 = vmul.f32 0.02, %v2297_v20  ;;  %v582_v44 = vmax.f32 %v543_v19, %v574_v41 }
  0xe3   : > { %v546_v21 = vpop.f32.mrf.mxu0 }
  0xe4   : > { %v585_v37 = vmax.f32 %v2297_v20, %v577_v29  ;;  %v575_v38 = vmul.f32 0.02, %v546_v21 }
  0xe5   : > { %v2300_v22 = vpop.f32.mrf.mxu0 }
  0xe6   : > { %v580_v24 = vmul.f32 0.02, %v2300_v22  ;;  %v591_v42 = vpack.c.bf16 %v585_v37, %v584_v40  ;;  %v583_v43 = vmax.f32 %v546_v21, %v575_v38 }
  0xe7   : > { %v559_v23 = vpop.f32.mrf.mxu0 }
  0xe8   : > { %v578_v26 = vmul.f32 0.02, %v559_v23  ;;  %v588_v30 = vmax.f32 %v2300_v22, %v580_v24  ;;  %v590_v45 = vpack.c.bf16 %v583_v43, %v582_v44  ;;  %v659_v24 = vpop.permute.xlu0 %658 }
  0xe9   : > { %v2301_v25 = vpop.f32.mrf.mxu0 }
  0xea   : > { %v581_v27 = vmul.f32 0.02, %v2301_v25  ;;  %v586_v34 = vmax.f32 %v559_v23, %v578_v26 }
  0xeb   : > { %v562_v28 = vpop.f32.mrf.mxu0 }
  0xec   : > { %v589_v31 = vmax.f32 %v2301_v25, %v581_v27  ;;  %v579_v32 = vmul.f32 0.02, %v562_v28  ;;  %v649_v40 = vpop.permute.xlu0 %648 }
  0xee   : > { %v587_v35 = vmax.f32 %v562_v28, %v579_v32  ;;  %v593_v36 = vpack.c.bf16 %v589_v31, %v588_v30 }
  0xf0   : > { %v592_v39 = vpack.c.bf16 %v587_v35, %v586_v34  ;;  %2302 = vmatprep.subr.bf16.mxu1 %v593_v36  ;;  %v654_v35 = vpop.permute.xlu1 %653 }
  0xf1   : > { %2303 = vmatpush3.bf16.msra.mxu1 %v593_v36 }
  0xf2   : > { %2304 = vmatprep.subr.bf16.mxu1 %v592_v39 }
  0xf5   : > { %2305 = vmatpush3.bf16.msra.mxu1 %v592_v39 }
  0xf6   : > { %2306 = vmatprep.subr.bf16.mxu1 %v591_v42 }
  0xf9   : > { %2307 = vmatpush3.bf16.msra.mxu1 %v591_v42 }
  0xfa   : > { %2308 = vmatprep.subr.bf16.mxu1 %v590_v45 }
  0xfd   : > { %2309 = vmatpush3.bf16.msra.mxu1 %v590_v45 }
 0x100   : > { %2311 = vmatmul.mubr.msk.bf16.vlgmr.msra.gmra.mxu1 %vm746_vm1, %v2448_v46 }
 0x101   : > { %2314 = vmatprep.mubr.msk.bf16.mxu1 %vm746_vm1, %v2449_v47 }
 0x108   : > { %2315 = vmatmul.mubr.msk.bf16.gmra.mxu1 %vm746_vm1, %v2450_v48  ;;  %v644_v48 = vpop.permute.xlu1 %643 }
 0x109   : > { %2318 = vmatprep.mubr.msk.bf16.mxu1 %vm746_vm1, %v2451_v49 }
 0x110   : > { %2319 = vmatmul.mubr.msk.bf16.gmra.mxu1 %vm746_vm1, %v2452_v50 }
 0x111   : > { %2322 = vmatprep.mubr.msk.bf16.mxu1 %vm746_vm1, %v2453_v51 }
 0x118   : > { %2323 = vmatmul.mubr.msk.bf16.gmra.mxu1 %vm746_vm1, %v2454_v52  ;;  %v639_v52 = vpop.permute.xlu0 %638 }
 0x1c0   : > { %v2885_v54 = vpop.f32.mrf.mxu1 }
 0x1c2   : > { %v2887_v55 = vpop.f32.mrf.mxu1 }
 0x1c4   : > { %v2889_v56 = vpop.f32.mrf.mxu1 }
 0x1c5   : > { %v817_v53 = vadd.f32 %v2889_v56, %v644_v48 }
 0x1c6   : > { %v2891_v58 = vpop.f32.mrf.mxu1 }
 0x1c8   : > { %v2316_v60 = vpop.f32.mrf.mxu1 }
 0x1c9   : > { %v830_v41 = vadd.f32 %v2316_v60, %v659_v24  ;;  %v814_v60 = vadd.f32 %v2885_v54, %v639_v52  ;;  %v2466_v24 = vld [vmem:[%s3175_s4 + $0x58] sm:$0xff]  }
 0x1ca   : > { %v821_v61 = vpop.f32.mrf.mxu1 }
 0x1cb   : > { %v874_v49 = vmul.f32 0.02, %v830_v41  ;;  %v822_v50 = vadd.f32 %v821_v61, %v649_v40 }
 0x1cc   : > { %v2317_v63 = vpop.f32.mrf.mxu1 }
 0x1cd   : > { %v833_v36 = vadd.f32 %v2317_v63, %v664_v18  ;;  %v890_v63 = vmax.f32 %v830_v41, %v874_v49  ;;  %v2460_v18 = vld [vmem:[%s3175_s4 + $0x28] sm:$0xff]  }
 0x1ce   : > { %v824_v1 = vpop.f32.mrf.mxu1  ;;  %v2473_v49 = vld [vmem:[%s3177_s6 + $0x4] ss:$8 sps:$4 sm:$0xff]  }
 0x1cf   : > { %v875_v44 = vmul.f32 0.02, %v833_v36  ;;  %v825_v45 = vadd.f32 %v824_v1, %v654_v35  ;;  %v634_v1 = vpop.permute.xlu1 %633  ;;  %1693 = vmatprep.mubr.bf16.mxu1 %v2473_v49 }
 0x1d0   : > { %v2320_v2 = vpop.f32.mrf.mxu1 }
 0x1d1   : > { %v846_v19 = vadd.f32 %v2320_v2, %v679_v5  ;;  %v871_v2 = vmul.f32 0.02, %v817_v53  ;;  %v629_v5 = vpop.permute.xlu0 %628 }
 0x1d2   : > { %v837_v4 = vpop.f32.mrf.mxu1  ;;  %v806_v56 = vadd.f32 %v2887_v55, %v629_v5  ;;  %v2456_v55 = vld [vmem:[%s3175_s4 + $0x8] sm:$0xff]  }
 0x1d3   : > { %v878_v30 = vmul.f32 0.02, %v846_v19  ;;  %v838_v31 = vadd.f32 %v837_v4, %v669_v11 }
 0x1d4   : > { %v2321_v6 = vpop.f32.mrf.mxu1  ;;  %v868_v11 = vmul.f32 0.02, %v806_v56 }
 0x1d5   : > { %v849_v14 = vadd.f32 %v2321_v6, %v684_v3  ;;  %v894_v42 = vmax.f32 %v846_v19, %v878_v30  ;;  %v876_v43 = vmul.f32 0.02, %v838_v31  ;;  %v809_v3 = vadd.f32 %v2891_v58, %v634_v1  ;;  %v2461_v19 = vld [vmem:[%s3175_s4 + $0x30] sm:$0xff]   ;;  %v2944_v30 = vpop.permute.xlu1 %1129 }
 0x1d6   : > { %v840_v7 = vpop.f32.mrf.mxu1  ;;  %v870_v6 = vmul.f32 0.02, %v814_v60  ;;  %v884_v58 = vmax.f32 %v806_v56, %v868_v11 }
 0x1d7   : > { %v879_v25 = vmul.f32 0.02, %v849_v14  ;;  %v841_v26 = vadd.f32 %v840_v7, %v674_v8  ;;  %v892_v51 = vmax.f32 %v838_v31, %v876_v43  ;;  %v887_v8 = vmax.f32 %v817_v53, %v871_v2 }
 0x1d8   : > { %v2324_v9 = vpop.f32.mrf.mxu1  ;;  %v886_v54 = vmax.f32 %v814_v60, %v870_v6 }
 0x1d9   : > { %v862_v10 = vadd.f32 %v2324_v9, %v699_v59  ;;  %v895_v37 = vmax.f32 %v849_v14, %v879_v25  ;;  %v877_v38 = vmul.f32 0.02, %v841_v26  ;;  %v873_v59 = vmul.f32 0.02, %v825_v45  ;;  %v2467_v25 = vld [vmem:[%s3175_s4 + $0x60] sm:$0xff]  }
 0x1da   : > { %v853_v12 = vpop.f32.mrf.mxu1  ;;  %v869_v9 = vmul.f32 0.02, %v809_v3 }
 0x1db   : > { %v854_v13 = vadd.f32 %v853_v12, %v689_v57  ;;  %v882_v16 = vmul.f32 0.02, %v862_v10  ;;  %v893_v46 = vmax.f32 %v841_v26, %v877_v38  ;;  %v905_v47 = vpack.c.bf16 %v895_v37, %v894_v42  ;;  %v2468_v26 = vld [vmem:[%s3175_s4 + $0x68] sm:$0xff]  }
 0x1dc   : > { %v2325_v15 = vpop.f32.mrf.mxu1  ;;  %v891_v57 = vmax.f32 %v833_v36, %v875_v44  ;;  %v889_v4 = vmax.f32 %v825_v45, %v873_v59  ;;  %v885_v12 = vmax.f32 %v809_v3, %v869_v9 }
 0x1dd   : > { %v865_v17 = vadd.f32 %v2325_v15, %v704_v0  ;;  %v880_v21 = vmul.f32 0.02, %v854_v13  ;;  %v898_v27 = vmax.f32 %v862_v10, %v882_v16  ;;  %v872_v0 = vmul.f32 0.02, %v822_v50  ;;  %v2457_v15 = vld [vmem:[%s3175_s4 + $0x10] sm:$0xff]   ;;  %v2458_v16 = vld [vmem:[%s3175_s4 + $0x18] sm:$0xff]  }
 0x1de   : > { %v856_v20 = vpop.f32.mrf.mxu1  ;;  %v903_v61 = vpack.c.bf16 %v891_v57, %v890_v63  ;;  %v900_v14 = vpack.c.bf16 %v885_v12, %v884_v58 }
 0x1df   : > { %v883_v22 = vmul.f32 0.02, %v865_v17  ;;  %v857_v23 = vadd.f32 %v856_v20, %v694_v62  ;;  %v896_v32 = vmax.f32 %v854_v13, %v880_v21  ;;  %v904_v62 = vpack.c.bf16 %v893_v46, %v892_v51  ;;  %v2462_v20 = vld [vmem:[%s3175_s4 + $0x38] sm:$0xff]   ;;  %v2463_v21 = vld [vmem:[%s3175_s4 + $0x40] sm:$0xff]  }
 0x1e0   : > { %v888_v7 = vmax.f32 %v822_v50, %v872_v0  ;;  %v901_v13 = vpack.c.bf16 %v887_v8, %v886_v54 }
 0x1e1   : > { %v899_v28 = vmax.f32 %v865_v17, %v883_v22  ;;  %v881_v29 = vmul.f32 0.02, %v857_v23  ;;  %v2459_v17 = vld [vmem:[%s3175_s4 + $0x20] sm:$0xff]   ;;  %v2464_v22 = vld [vmem:[%s3175_s4 + $0x48] sm:$0xff]  }
 0x1e2   : > { %v902_v10 = vpack.c.bf16 %v889_v4, %v888_v7 }
 0x1e3   : > { %v897_v33 = vmax.f32 %v857_v23, %v881_v29  ;;  %v907_v34 = vpack.c.bf16 %v899_v28, %v898_v27  ;;  %v2465_v23 = vld [vmem:[%s3175_s4 + $0x50] sm:$0xff]   ;;  %v2470_v28 = vld [vmem:[%s3175_s4 + $0x78] sm:$0xff]   ;;  %v2942_v29 = vpop.permute.xlu0 %1124 }
 0x1e4   : > { %v2469_v27 = vld [vmem:[%s3175_s4 + $0x70] sm:$0xff]  }
 0x1e5   : > { %2326 = vmatprep.subr.bf16.mxu0 %v907_v34  ;;  %v906_v39 = vpack.c.bf16 %v897_v33, %v896_v32  ;;  %v2948_v32 = vpop.permute.xlu1 %1049 }
 0x1e6   : > { %2327 = vmatpush3.bf16.msra.mxu0 %v907_v34 }
 0x1e7   : > { %2328 = vmatprep.subr.bf16.mxu0 %v906_v39  ;;  %v2946_v31 = vpop.permute.xlu0 %1044 }
 0x1e9   : > { %v2952_v34 = vpop.permute.xlu1 %1119 }
 0x1ea   : > { %2329 = vmatpush3.bf16.msra.mxu0 %v906_v39 }
 0x1eb   : > { %2330 = vmatprep.subr.bf16.mxu0 %v905_v47  ;;  %v2950_v33 = vpop.permute.xlu0 %1114 }
 0x1ed   : > { %v2956_v36 = vpop.permute.xlu1 %1039 }
 0x1ee   : > { %2331 = vmatpush3.bf16.msra.mxu0 %v905_v47 }
 0x1ef   : > { %2332 = vmatprep.subr.bf16.mxu0 %v904_v62  ;;  %v2954_v35 = vpop.permute.xlu0 %1034 }
 0x1f1   : > { %v2960_v38 = vpop.permute.xlu1 %1109 }
 0x1f2   : > { %2333 = vmatpush3.bf16.msra.mxu0 %v904_v62 }
 0x1f3   : > { %2334 = vmatprep.subr.bf16.mxu0 %v903_v61  ;;  %v2958_v37 = vpop.permute.xlu0 %1104 }
 0x1f5   : > { %v2964_v40 = vpop.permute.xlu1 %1029 }
 0x1f6   : > { %2335 = vmatpush3.bf16.msra.mxu0 %v903_v61 }
 0x1f7   : > { %2336 = vmatprep.subr.bf16.mxu0 %v902_v10  ;;  %v2962_v39 = vpop.permute.xlu0 %1024 }
 0x1f9   : > { %v2968_v42 = vpop.permute.xlu1 %1099 }
 0x1fa   : > { %2337 = vmatpush3.bf16.msra.mxu0 %v902_v10 }
 0x1fb   : > { %2338 = vmatprep.subr.bf16.mxu0 %v901_v13  ;;  %v2966_v41 = vpop.permute.xlu0 %1094 }
 0x1fd   : > { %v2972_v44 = vpop.permute.xlu1 %1019 }
 0x1fe   : > { %2339 = vmatpush3.bf16.msra.mxu0 %v901_v13 }
 0x1ff   : > { %2340 = vmatprep.subr.bf16.mxu0 %v900_v14  ;;  %v2970_v43 = vpop.permute.xlu0 %1014 }
 0x201   : > { %v2976_v46 = vpop.permute.xlu1 %1089 }
 0x202   : > { %2341 = vmatpush3.bf16.msra.mxu0 %v900_v14 }
 0x203   : > { %v2974_v45 = vpop.permute.xlu0 %1084 }
 0x205   : > { %2343 = vmatmul.mubr.bf16.vlgmr.msra.gmra.mxu0 %v2456_v55  ;;  %v1010_v48 = vpop.permute.xlu1 %1009 }
 0x206   : > { %2346 = vmatprep.mubr.bf16.mxu0 %v2457_v15 }
 0x207   : > { %v1005_v47 = vpop.permute.xlu0 %1004 }
 0x209   : > { %v2983_v51 = vpop.permute.xlu1 %1079 }
 0x20b   : > { %v2981_v50 = vpop.permute.xlu0 %1074 }
 0x20d   : > { %2347 = vmatmul.mubr.bf16.gmra.mxu0 %v2458_v16  ;;  %v1000_v53 = vpop.permute.xlu1 %999 }
 0x20e   : > { %2350 = vmatprep.mubr.bf16.mxu0 %v2459_v17 }
 0x20f   : > { %v995_v52 = vpop.permute.xlu0 %994 }
 0x211   : > { %v2987_v59 = vpop.permute.xlu1 %1069 }
 0x213   : > { %v2985_v57 = vpop.permute.xlu0 %1064 }
 0x215   : > { %2351 = vmatmul.mubr.bf16.gmra.mxu0 %v2460_v18  ;;  %v990_v60 = vpop.permute.xlu1 %989 }
 0x216   : > { %2354 = vmatprep.mubr.bf16.mxu0 %v2461_v19 }
 0x217   : > { %v985_v62 = vpop.permute.xlu0 %984 }
 0x219   : > { %v2991_v0 = vpop.permute.xlu1 %1059 }
 0x21b   : > { %v2989_v63 = vpop.permute.xlu0 %1054 }
 0x21d   : > { %2355 = vmatmul.mubr.bf16.gmra.mxu0 %v2462_v20  ;;  %v980_v7 = vpop.permute.xlu1 %979 }
 0x21e   : > { %2358 = vmatprep.mubr.bf16.mxu0 %v2463_v21 }
 0x21f   : > { %v975_v3 = vpop.permute.xlu0 %974 }
 0x225   : > { %2359 = vmatmul.mubr.bf16.gmra.mxu0 %v2464_v22 }
 0x226   : > { %2362 = vmatprep.mubr.bf16.mxu0 %v2465_v23 }
 0x22d   : > { %2363 = vmatmul.mubr.bf16.gmra.mxu0 %v2466_v24 }
 0x22e   : > { %2366 = vmatprep.mubr.bf16.mxu0 %v2467_v25 }
 0x235   : > { %2367 = vmatmul.mubr.bf16.gmra.mxu0 %v2468_v26 }
 0x236   : > { %2370 = vmatprep.mubr.bf16.mxu0 %v2469_v27 }
 0x23d   : > { %2371 = vmatmul.mubr.bf16.gmra.mxu0 %v2470_v28 }
 0x2c5   : > { %v2344_v1 = vpop.f32.mrf.mxu0 }
 0x2c6   : > { %v1271_v2 = vadd.f32 %v2344_v1, %v985_v62 }
 0x2c7   : > { %v1262_v4 = vpop.f32.mrf.mxu0 }
 0x2c8   : > { %v1263_v61 = vadd.f32 %v1262_v4, %v975_v3  ;;  %v1391_v6 = vmul.f32 0.02, %v1271_v2 }
 0x2c9   : > { %v2345_v5 = vpop.f32.mrf.mxu0 }
 0x2ca   : > { %v1274_v56 = vadd.f32 %v2345_v5, %v990_v60  ;;  %v1389_v9 = vmul.f32 0.02, %v1263_v61  ;;  %v1423_v12 = vmax.f32 %v1271_v2, %v1391_v6 }
 0x2cb   : > { %v1265_v8 = vpop.f32.mrf.mxu0 }
 0x2cc   : > { %v1392_v10 = vmul.f32 0.02, %v1274_v56  ;;  %v1266_v54 = vadd.f32 %v1265_v8, %v980_v7  ;;  %v1421_v15 = vmax.f32 %v1263_v61, %v1389_v9 }
 0x2cd   : > { %v2348_v11 = vpop.f32.mrf.mxu0 }
 0x2ce   : > { %v1424_v13 = vmax.f32 %v1274_v56, %v1392_v10  ;;  %v1390_v58 = vmul.f32 0.02, %v1266_v54  ;;  %v1287_v14 = vadd.f32 %v2348_v11, %v1005_v47 }
 0x2cf   : > { %v1278_v55 = vpop.f32.mrf.mxu0 }
 0x2d0   : > { %v2993_v16 = vpack.c.bf16 %v1424_v13, %v1423_v12  ;;  %v1422_v17 = vmax.f32 %v1266_v54, %v1390_v58  ;;  %v1279_v18 = vadd.f32 %v1278_v55, %v995_v52  ;;  %v1395_v21 = vmul.f32 0.02, %v1287_v14 }
 0x2d1   : > { %v2349_v19 = vpop.f32.mrf.mxu0 }
 0x2d2   : > { %v2995_v20 = vpack.c.bf16 %v1422_v17, %v1421_v15  ;;  %v1290_v22 = vadd.f32 %v2349_v19, %v1010_v48  ;;  %v1393_v24 = vmul.f32 0.02, %v1279_v18  ;;  %v1427_v28 = vmax.f32 %v1287_v14, %v1395_v21 }
 0x2d3   : > { %v1281_v23 = vpop.f32.mrf.mxu0 }
 0x2d4   : > { %v1396_v25 = vmul.f32 0.02, %v1290_v22  ;;  %v1282_v26 = vadd.f32 %v1281_v23, %v1000_v53  ;;  %v1425_v60 = vmax.f32 %v1279_v18, %v1393_v24 }
 0x2d5   : > { %v2352_v27 = vpop.f32.mrf.mxu0 }
 0x2d6   : > { %v1428_v49 = vmax.f32 %v1290_v22, %v1396_v25  ;;  %v1394_v62 = vmul.f32 0.02, %v1282_v26 }
 0x2d7   : > { %v2997_v47 = vpop.f32.mrf.mxu0 }
 0x2d8   : > { %v2999_v1 = vpack.c.bf16 %v1428_v49, %v1427_v28  ;;  %v1426_v2 = vmax.f32 %v1282_v26, %v1394_v62 }
 0x2d9   : > { %v2353_v52 = vpop.f32.mrf.mxu0 }
 0x2da   : > { %v3001_v3 = vpack.c.bf16 %v1426_v2, %v1425_v60 }
 0x2db   : > { %v1297_v4 = vpop.f32.mrf.mxu0 }
 0x2dd   : > { %v2356_v61 = vpop.f32.mrf.mxu0 }
 0x2de   : > { %v1319_v18 = vadd.f32 %v2356_v61, %v2946_v31 }
 0x2df   : > { %v1310_v48 = vpop.f32.mrf.mxu0 }
 0x2e0   : > { %v1403_v49 = vmul.f32 0.02, %v1319_v18 }
 0x2e1   : > { %v2357_v5 = vpop.f32.mrf.mxu0 }
 0x2e2   : > { %v1322_v55 = vadd.f32 %v2357_v5, %v2948_v32  ;;  %v1311_v32 = vadd.f32 %v1310_v48, %v2954_v35  ;;  %v1435_v35 = vmax.f32 %v1319_v18, %v1403_v49 }
 0x2e3   : > { %v1313_v6 = vpop.f32.mrf.mxu0 }
 0x2e4   : > { %v1404_v22 = vmul.f32 0.02, %v1322_v55  ;;  %v1314_v23 = vadd.f32 %v1313_v6, %v2956_v36  ;;  %v1401_v48 = vmul.f32 0.02, %v1311_v32 }
 0x2e5   : > { %v3003_v56 = vpop.f32.mrf.mxu0 }
 0x2e6   : > { %v1436_v61 = vmax.f32 %v1322_v55, %v1404_v22  ;;  %v1402_v36 = vmul.f32 0.02, %v1314_v23  ;;  %v1433_v18 = vmax.f32 %v1311_v32, %v1401_v48 }
 0x2e7   : > { %v3005_v53 = vpop.f32.mrf.mxu0 }
 0x2e8   : > { %v1434_v55 = vmax.f32 %v1314_v23, %v1402_v36 }
 0x2e9   : > { %v3007_v7 = vpop.f32.mrf.mxu0 }
 0x2ea   : > { %v1459_v23 = vpack.c.bf16 %v1434_v55, %v1433_v18  ;;  %v1338_v32 = vadd.f32 %v3007_v7, %v2987_v59  ;;  %v1327_v7 = vadd.f32 %v3005_v53, %v2989_v63  ;;  %v2471_v63 = vld [vmem:[%s3177_s6] ss:$8 sps:$4 sm:$0xff]   ;;  %v2480_v53 = vld [vmem:[%s3177_s6 + $0x34] ss:$8 sps:$4 sm:$0xff]   ;;  %v2494_v55 = vld [vmem:[%s3177_s6 + $0x70] ss:$8 sps:$4 sm:$0xff]  }
 0x2eb   : > { %v3009_v8 = vpop.f32.mrf.mxu0 }
 0x2ed   : > { %v2364_v9 = vpop.f32.mrf.mxu0 }
 0x2ef   : > { %v3011_v10 = vpop.f32.mrf.mxu0 }
 0x2f1   : > { %v2365_v54 = vpop.f32.mrf.mxu0 }
 0x2f3   : > { %v1345_v11 = vpop.f32.mrf.mxu0 }
 0x2f5   : > { %v2368_v12 = vpop.f32.mrf.mxu0 }
 0x2f6   : > { %v1367_v62 = vadd.f32 %v2368_v12, %v2958_v37 }
 0x2f7   : > { %v1358_v13 = vpop.f32.mrf.mxu0 }
 0x2f8   : > { %v1415_v37 = vmul.f32 0.02, %v1367_v62  ;;  %v1359_v12 = vadd.f32 %v1358_v13, %v2966_v41  ;;  %v1351_v41 = vadd.f32 %v2364_v9, %v2974_v45 }
 0x2f9   : > { %v2369_v58 = vpop.f32.mrf.mxu0 }
 0x2fa   : > { %v1370_v24 = vadd.f32 %v2369_v58, %v2960_v38  ;;  %v1447_v13 = vmax.f32 %v1367_v62, %v1415_v37  ;;  %v2482_v37 = vld [vmem:[%s3177_s6 + $0x30] ss:$8 sps:$4 sm:$0xff]  }
 0x2fb   : > { %v1361_v14 = vpop.f32.mrf.mxu0 }
 0x2fc   : > { %v1416_v5 = vmul.f32 0.02, %v1370_v24  ;;  %v1362_v38 = vadd.f32 %v1361_v14, %v2968_v42  ;;  %v1354_v42 = vadd.f32 %v2365_v54, %v2976_v46  ;;  %v1346_v46 = vadd.f32 %v1345_v11, %v2983_v51 }
 0x2fd   : > { %v2372_v15 = vpop.f32.mrf.mxu0  ;;  %v1335_v11 = vadd.f32 %v3003_v56, %v2985_v57 }
 0x2fe   : > { %v1383_v17 = vadd.f32 %v2372_v15, %v2942_v29  ;;  %v1303_v15 = vadd.f32 %v2352_v27, %v2962_v39  ;;  %v1448_v14 = vmax.f32 %v1370_v24, %v1416_v5  ;;  %v1295_v27 = vadd.f32 %v2997_v47, %v2970_v43 }
 0x2ff   : > { %v1374_v19 = vpop.f32.mrf.mxu0  ;;  %v1343_v43 = vadd.f32 %v3011_v10, %v2981_v50  ;;  %v1408_v50 = vmul.f32 0.02, %v1338_v32  ;;  %v1330_v10 = vadd.f32 %v3009_v8, %v2991_v0  ;;  %v1407_v59 = vmul.f32 0.02, %v1335_v11 }
 0x300   : > { %v1375_v21 = vadd.f32 %v1374_v19, %v2950_v33  ;;  %v1419_v26 = vmul.f32 0.02, %v1383_v17  ;;  %v1306_v33 = vadd.f32 %v2353_v52, %v2964_v40  ;;  %v1298_v40 = vadd.f32 %v1297_v4, %v2972_v44 }
 0x301   : > { %v2373_v25 = vpop.f32.mrf.mxu0  ;;  %v1460_v52 = vpack.c.bf16 %v1436_v61, %v1435_v35  ;;  %v1399_v39 = vmul.f32 0.02, %v1303_v15  ;;  %v1466_v24 = vpack.c.bf16 %v1448_v14, %v1447_v13  ;;  %v1397_v49 = vmul.f32 0.02, %v1295_v27  ;;  %v3094_v14 = vpop.permute.xlu1 %1578 }
 0x302   : > { %v1386_v28 = vadd.f32 %v2373_v25, %v2944_v30  ;;  %v1417_v60 = vmul.f32 0.02, %v1375_v21  ;;  %v1451_v6 = vmax.f32 %v1383_v17, %v1419_v26  ;;  %v1414_v17 = vmul.f32 0.02, %v1362_v38 }
 0x303   : > { %v1377_v29 = vpop.f32.mrf.mxu0  ;;  %v1398_v4 = vmul.f32 0.02, %v1298_v40  ;;  %v1412_v26 = vmul.f32 0.02, %v1354_v42  ;;  %v1429_v51 = vmax.f32 %v1295_v27, %v1397_v49  ;;  %v1409_v61 = vmul.f32 0.02, %v1343_v43 }
 0x304   : > { %v1420_v31 = vmul.f32 0.02, %v1386_v28  ;;  %v1378_v2 = vadd.f32 %v1377_v29, %v2952_v34  ;;  %v1449_v19 = vmax.f32 %v1375_v21, %v1417_v60  ;;  %v1400_v29 = vmul.f32 0.02, %v1306_v33  ;;  %v2495_v27 = vld [vmem:[%s3179_s8] sm:$0xff]  }
 0x305   : > { %v1413_v21 = vmul.f32 0.02, %v1359_v12  ;;  %v1446_v54 = vmax.f32 %v1362_v38, %v1414_v17  ;;  %v1411_v60 = vmul.f32 0.02, %v1351_v41  ;;  %v1430_v9 = vmax.f32 %v1298_v40, %v1398_v4  ;;  %v2491_v40 = vld [vmem:[%s3177_s6 + $0x60] ss:$8 sps:$4 sm:$0xff]   ;;  %2390 = vmatprep.mubr.bf16.mxu0 %v2495_v27 }
 0x306   : > { %v1452_v58 = vmax.f32 %v1386_v28, %v1420_v31  ;;  %v1418_v30 = vmul.f32 0.02, %v1378_v2  ;;  %v1432_v44 = vmax.f32 %v1306_v33, %v1400_v29  ;;  %v1431_v28 = vmax.f32 %v1303_v15, %v1399_v39  ;;  %v2489_v29 = vld [vmem:[%s3177_s6 + $0x64] ss:$8 sps:$4 sm:$0xff]  }
 0x307   : > { %v1445_v47 = vmax.f32 %v1359_v12, %v1413_v21  ;;  %v1444_v62 = vmax.f32 %v1354_v42, %v1412_v26  ;;  %v1410_v31 = vmul.f32 0.02, %v1346_v46  ;;  %v1443_v33 = vmax.f32 %v1351_v41, %v1411_v60  ;;  %v2483_v12 = vld [vmem:[%s3177_s6 + $0x44] ss:$8 sps:$4 sm:$0xff]   ;;  %v3092_v42 = vpop.permute.xlu0 %1573 }
 0x308   : > { %v1450_v25 = vmax.f32 %v1378_v2, %v1418_v30  ;;  %v1468_v34 = vpack.c.bf16 %v1452_v58, %v1451_v6  ;;  %v1458_v45 = vpack.c.bf16 %v1432_v44, %v1431_v28  ;;  %v1457_v36 = vpack.c.bf16 %v1430_v9, %v1429_v51 }
 0x309   : > { %v1465_v2 = vpack.c.bf16 %v1446_v54, %v1445_v47  ;;  %v1442_v5 = vmax.f32 %v1346_v46, %v1410_v31  ;;  %v1464_v38 = vpack.c.bf16 %v1444_v62, %v1443_v33  ;;  %v1441_v6 = vmax.f32 %v1343_v43, %v1409_v61 }
 0x30a   : > { %2207 = vmatprep.subr.bf16.mxu1 %v1468_v34  ;;  %v1467_v22 = vpack.c.bf16 %v1450_v25, %v1449_v19  ;;  %v1440_v58 = vmax.f32 %v1338_v32, %v1408_v50  ;;  %v1406_v30 = vmul.f32 0.02, %v1330_v10  ;;  %v1439_v56 = vmax.f32 %v1335_v11, %v1407_v59  ;;  %v2485_v19 = vld [vmem:[%s3177_s6 + $0x40] ss:$8 sps:$4 sm:$0xff]   ;;  %v2486_v25 = vld [vmem:[%s3177_s6 + $0x54] ss:$8 sps:$4 sm:$0xff]  }
 0x30b   : > { %2208 = vmatpush3.bf16.msra.mxu1 %v1460_v52  ;;  %v1463_v57 = vpack.c.bf16 %v1442_v5, %v1441_v6  ;;  %v1405_v15 = vmul.f32 0.02, %v1327_v7  ;;  %v2488_v34 = vld [vmem:[%s3177_s6 + $0x50] ss:$8 sps:$4 sm:$0xff]   ;;  %v2492_v52 = vld [vmem:[%s3177_s6 + $0x74] ss:$8 sps:$4 sm:$0xff]   ;;  %v3096_v17 = vpop.permute.xlu0 %1563 }
 0x30c   : > { %2209 = vmatprep.subr.bf16.mxu1 %v1467_v22  ;;  %v1438_v35 = vmax.f32 %v1330_v10, %v1406_v30  ;;  %v1462_v48 = vpack.c.bf16 %v1440_v58, %v1439_v56  ;;  %v3098_v22 = vpop.permute.xlu1 %1568 }
 0x30d   : > { %v1437_v0 = vmax.f32 %v1327_v7, %v1405_v15 }
 0x30f   : > { %2210 = vmatpush3.bf16.msra.mxu1 %v1459_v23  ;;  %v1461_v8 = vpack.c.bf16 %v1438_v35, %v1437_v0  ;;  %v3100_v39 = vpop.permute.xlu0 %1553 }
 0x310   : > { %2211 = vmatprep.subr.bf16.mxu1 %v1466_v24  ;;  %v3105_v18 = vpop.permute.xlu1 %1558 }
 0x313   : > { %2212 = vmatpush3.bf16.msra.mxu1 %v1458_v45  ;;  %v3107_v41 = vpop.permute.xlu0 %1543 }
 0x314   : > { %2213 = vmatprep.subr.bf16.mxu1 %v1465_v2  ;;  %v3109_v13 = vpop.permute.xlu1 %1548 }
 0x317   : > { %2214 = vmatpush3.bf16.msra.mxu1 %v1457_v36  ;;  %v3111_v21 = vpop.permute.xlu0 %1533 }
 0x318   : > { %2215 = vmatprep.subr.bf16.mxu1 %v1464_v38  ;;  %v3113_v44 = vpop.permute.xlu1 %1538 }
 0x31b   : > { %2216 = vmatpush3.bf16.msra.mxu1 %v2999_v1  ;;  %v2474_v1 = vld [vmem:[%s3177_s6 + $0x14] ss:$8 sps:$4 sm:$0xff]   ;;  %v3115_v4 = vpop.permute.xlu0 %1523 }
 0x31c   : > { %2217 = vmatprep.subr.bf16.mxu1 %v1463_v57  ;;  %v3117_v23 = vpop.permute.xlu1 %1528 }
 0x31f   : > { %2218 = vmatpush3.bf16.msra.mxu1 %v3001_v3  ;;  %v2476_v3 = vld [vmem:[%s3177_s6 + $0x10] ss:$8 sps:$4 sm:$0xff]   ;;  %v1514_v26 = vpop.permute.xlu0 %1513 }
 0x320   : > { %2219 = vmatprep.subr.bf16.mxu1 %v1462_v48  ;;  %v1519_v54 = vpop.permute.xlu1 %1518 }
 0x323   : > { %2220 = vmatpush3.bf16.msra.mxu1 %v2993_v16  ;;  %v2477_v16 = vld [vmem:[%s3177_s6 + $0x24] ss:$8 sps:$4 sm:$0xff]   ;;  %v1504_v49 = vpop.permute.xlu0 %1503 }
 0x324   : > { %2221 = vmatprep.subr.bf16.mxu1 %v1461_v8  ;;  %v1509_v9 = vpop.permute.xlu1 %1508 }
 0x327   : > { %2222 = vmatpush3.bf16.msra.mxu1 %v2995_v20  ;;  %v2479_v20 = vld [vmem:[%s3177_s6 + $0x20] ss:$8 sps:$4 sm:$0xff]  }
 0x32a   : > { %1694 = vmatmul.mubr.bf16.vlgmr.msra.gmra.mxu1 %v2471_v63 }
 0x32b   : > { %1701 = vmatprep.mubr.bf16.mxu1 %v2474_v1 }
 0x332   : > { %1702 = vmatmul.mubr.bf16.gmra.mxu1 %v2476_v3 }
 0x333   : > { %1709 = vmatprep.mubr.bf16.mxu1 %v2477_v16 }
 0x33a   : > { %1710 = vmatmul.mubr.bf16.gmra.mxu1 %v2479_v20 }
 0x33b   : > { %1717 = vmatprep.mubr.bf16.mxu1 %v2480_v53 }
 0x342   : > { %1718 = vmatmul.mubr.bf16.gmra.mxu1 %v2482_v37 }
 0x343   : > { %1725 = vmatprep.mubr.bf16.mxu1 %v2483_v12 }
 0x34a   : > { %1726 = vmatmul.mubr.bf16.gmra.mxu1 %v2485_v19 }
 0x34b   : > { %1733 = vmatprep.mubr.bf16.mxu1 %v2486_v25 }
 0x352   : > { %1734 = vmatmul.mubr.bf16.gmra.mxu1 %v2488_v34 }
 0x353   : > { %1741 = vmatprep.mubr.bf16.mxu1 %v2489_v29 }
 0x35a   : > { %1742 = vmatmul.mubr.bf16.gmra.mxu1 %v2491_v40 }
 0x35b   : > { %1749 = vmatprep.mubr.bf16.mxu1 %v2492_v52 }
 0x362   : > { %1750 = vmatmul.mubr.bf16.gmra.mxu1 %v2494_v55 }
 0x3ea   : > { %v2223_v46 = vpop.f32.mrf.mxu1 }
 0x3ec   : > { %v2224_v24 = vpop.f32.mrf.mxu1 }
 0x3ed   : > { %v2225_v28 = vadd.f32 %v2224_v24, %v2223_v46 }
 0x3ee   : > { %v2226_v60 = vpop.f32.mrf.mxu1 }
 0x3ef   : > { %v1696_v43 = vadd.f32 %v2225_v28, %v1504_v49 }
 0x3f0   : > { %v2227_v47 = vpop.f32.mrf.mxu1 }
 0x3f1   : > { %v2228_v45 = vadd.f32 %v2227_v47, %v2226_v60  ;;  %v1758_v62 = vmul.f32 0.02, %v1696_v43 }
 0x3f2   : > { %v2229_v32 = vpop.f32.mrf.mxu1 }
 0x3f3   : > { %v1699_v31 = vadd.f32 %v2228_v45, %v1509_v9  ;;  %v1774_v61 = vmax.f32 %v1696_v43, %v1758_v62 }
 0x3f4   : > { %v2230_v2 = vpop.f32.mrf.mxu1 }
 0x3f5   : > { %v1759_v51 = vmul.f32 0.02, %v1699_v31  ;;  %v2231_v11 = vadd.f32 %v2230_v2, %v2229_v32 }
 0x3f6   : > { %v2232_v33 = vpop.f32.mrf.mxu1 }
 0x3f7   : > { %v1775_v36 = vmax.f32 %v1699_v31, %v1759_v51  ;;  %v1704_v50 = vadd.f32 %v2231_v11, %v1514_v26 }
 0x3f8   : > { %v2233_v10 = vpop.f32.mrf.mxu1 }
 0x3f9   : > { %v2234_v5 = vadd.f32 %v2233_v10, %v2232_v33  ;;  %v3119_v38 = vpack.c.bf16 %v1775_v36, %v1774_v61  ;;  %v1760_v7 = vmul.f32 0.02, %v1704_v50 }
 0x3fa   : > { %v3121_v59 = vpop.f32.mrf.mxu1 }
 0x3fb   : > { %v1707_v6 = vadd.f32 %v2234_v5, %v1519_v54  ;;  %v1776_v56 = vmax.f32 %v1704_v50, %v1760_v7 }
 0x3fc   : > { %v3123_v58 = vpop.f32.mrf.mxu1 }
 0x3fd   : > { %v1761_v30 = vmul.f32 0.02, %v1707_v6 }
 0x3fe   : > { %v2238_v57 = vpop.f32.mrf.mxu1 }
 0x3ff   : > { %v1777_v15 = vmax.f32 %v1707_v6, %v1761_v30 }
 0x400   : > { %v2239_v35 = vpop.f32.mrf.mxu1 }
 0x401   : > { %v3125_v48 = vpack.c.bf16 %v1777_v15, %v1776_v56  ;;  %v2240_v15 = vadd.f32 %v2239_v35, %v2238_v57 }
 0x402   : > { %v2241_v0 = vpop.f32.mrf.mxu1 }
 0x404   : > { %v2242_v8 = vpop.f32.mrf.mxu1 }
 0x405   : > { %v2243_v7 = vadd.f32 %v2242_v8, %v2241_v0 }
 0x406   : > { %v2244_v63 = vpop.f32.mrf.mxu1 }
 0x408   : > { %v2245_v1 = vpop.f32.mrf.mxu1 }
 0x40a   : > { %v2247_v3 = vpop.f32.mrf.mxu1 }
 0x40c   : > { %v2248_v16 = vpop.f32.mrf.mxu1 }
 0x40d   : > { %v2249_v11 = vadd.f32 %v2248_v16, %v2247_v3 }
 0x40e   : > { %v2250_v20 = vpop.f32.mrf.mxu1 }
 0x40f   : > { %v1728_v6 = vadd.f32 %v2249_v11, %v3107_v41  ;;  %v1715_v41 = vadd.f32 %v2240_v15, %v3117_v23 }
 0x410   : > { %v2251_v53 = vpop.f32.mrf.mxu1 }
 0x411   : > { %v2252_v32 = vadd.f32 %v2251_v53, %v2250_v20 }
 0x412   : > { %v2253_v37 = vpop.f32.mrf.mxu1 }
 0x414   : > { %v2254_v12 = vpop.f32.mrf.mxu1 }
 0x415   : > { %v2255_v47 = vadd.f32 %v2254_v12, %v2253_v37  ;;  %v1763_v37 = vmul.f32 0.02, %v1715_v41 }
 0x416   : > { %v2256_v19 = vpop.f32.mrf.mxu1 }
 0x417   : > { %v1736_v33 = vadd.f32 %v2255_v47, %v3100_v39 }
 0x418   : > { %v2257_v25 = vpop.f32.mrf.mxu1 }
 0x419   : > { %v2258_v28 = vadd.f32 %v2257_v25, %v2256_v19 }
 0x41a   : > { %v2259_v34 = vpop.f32.mrf.mxu1 }
 0x41b   : > { %v1739_v62 = vadd.f32 %v2258_v28, %v3105_v18  ;;  %v1768_v18 = vmul.f32 0.02, %v1736_v33 }
 0x41c   : > { %v2260_v29 = vpop.f32.mrf.mxu1 }
 0x41d   : > { %v2261_v46 = vadd.f32 %v2260_v29, %v2259_v34  ;;  %v1769_v50 = vmul.f32 0.02, %v1739_v62  ;;  %v1784_v0 = vmax.f32 %v1736_v33, %v1768_v18  ;;  %v2497_v29 = vld [vmem:[%s3179_s8 + $0x10] sm:$0xff]  }
 0x41e   : > { %v2262_v40 = vpop.f32.mrf.mxu1 }
 0x41f   : > { %v1744_v45 = vadd.f32 %v2261_v46, %v3096_v17  ;;  %v1785_v39 = vmax.f32 %v1739_v62, %v1769_v50 }
 0x420   : > { %v2263_v52 = vpop.f32.mrf.mxu1 }
 0x421   : > { %v2264_v27 = vadd.f32 %v2263_v52, %v2262_v40  ;;  %v1770_v61 = vmul.f32 0.02, %v1744_v45  ;;  %v1795_v57 = vpack.c.bf16 %v1785_v39, %v1784_v0  ;;  %v2498_v40 = vld [vmem:[%s3179_s8 + $0x18] sm:$0xff]   ;;  %v1852_v52 = vpop.permute.xlu1 %1851 }
 0x422   : > { %v2265_v55 = vpop.f32.mrf.mxu1 }
 0x423   : > { %v1747_v49 = vadd.f32 %v2264_v27, %v3098_v22  ;;  %v2246_v22 = vadd.f32 %v2245_v1, %v2244_v63  ;;  %v1786_v30 = vmax.f32 %v1744_v45, %v1770_v61  ;;  %v1720_v63 = vadd.f32 %v2243_v7, %v3111_v21  ;;  %v1847_v27 = vpop.permute.xlu0 %1846 }
 0x424   : > { %v2266_v26 = vpop.f32.mrf.mxu1  ;;  %v1766_v1 = vmul.f32 0.02, %v1728_v6 }
 0x425   : > { %v2267_v54 = vadd.f32 %v2266_v26, %v2265_v55  ;;  %v1771_v31 = vmul.f32 0.02, %v1747_v49  ;;  %v1764_v35 = vmul.f32 0.02, %v1720_v63  ;;  %v1842_v46 = vpop.permute.xlu1 %1841 }
 0x426   : > { %v2268_v24 = vpop.f32.mrf.mxu1  ;;  %v1782_v53 = vmax.f32 %v1728_v6, %v1766_v1 }
 0x427   : > { %v1752_v60 = vadd.f32 %v2267_v54, %v3092_v42  ;;  %v1731_v42 = vadd.f32 %v2252_v32, %v3109_v13  ;;  %v1787_v10 = vmax.f32 %v1747_v49, %v1771_v31  ;;  %v2237_v13 = vadd.f32 %v3123_v58, %v3121_v59 }
 0x428   : > { %v2269_v43 = vpop.f32.mrf.mxu1  ;;  %v1780_v21 = vmax.f32 %v1720_v63, %v1764_v35  ;;  %v1779_v58 = vmax.f32 %v1715_v41, %v1763_v37  ;;  %v1963_v41 = vld [vmem:[%s3181_s10] sm:$0x3] }
 0x429   : > { %v2270_v9 = vadd.f32 %v2269_v43, %v2268_v24  ;;  %v1772_v2 = vmul.f32 0.02, %v1752_v60  ;;  %v1767_v3 = vmul.f32 0.02, %v1731_v42  ;;  %v1796_v16 = vpack.c.bf16 %v1787_v10, %v1786_v30  ;;  %v1837_v24 = vpop.permute.xlu0 %1836  ;;  %v1832_v43 = vpop.permute.xlu1 %1831 }
 0x42b   : > { %v1755_v51 = vadd.f32 %v2270_v9, %v3094_v14  ;;  %v1788_v5 = vmax.f32 %v1752_v60, %v1772_v2  ;;  %v1723_v14 = vadd.f32 %v2246_v22, %v3113_v44  ;;  %v1783_v20 = vmax.f32 %v1731_v42, %v1767_v3 }
 0x42c   : > { %v1712_v44 = vadd.f32 %v2237_v13, %v3115_v4  ;;  %v2496_v4 = vld [vmem:[%s3179_s8 + $0x8] sm:$0xff]  }
 0x42d   : > { %v1773_v36 = vmul.f32 0.02, %v1755_v51  ;;  %v1765_v8 = vmul.f32 0.02, %v1723_v14  ;;  %v1794_v19 = vpack.c.bf16 %v1783_v20, %v1782_v53  ;;  %v1827_v62 = vpop.permute.xlu0 %1826  ;;  %v1822_v50 = vpop.permute.xlu1 %1821 }
 0x42e   : > { %v1762_v59 = vmul.f32 0.02, %v1712_v44 }
 0x42f   : > { %v1789_v17 = vmax.f32 %v1755_v51, %v1773_v36  ;;  %v1781_v12 = vmax.f32 %v1723_v14, %v1765_v8 }
 0x430   : > { %v1778_v23 = vmax.f32 %v1712_v44, %v1762_v59 }
 0x431   : > { %v1797_v56 = vpack.c.bf16 %v1789_v17, %v1788_v5  ;;  %v1793_v25 = vpack.c.bf16 %v1781_v12, %v1780_v21  ;;  %v1817_v6 = vpop.permute.xlu0 %1816 }
 0x432   : > { %v1792_v34 = vpack.c.bf16 %v1779_v58, %v1778_v23 }
 0x433   : > { %2374 = vmatprep.subr.bf16.mxu0 %v1797_v56 }
 0x434   : > { %2375 = vmatpush3.bf16.msra.mxu0 %v1797_v56 }
 0x435   : > { %2376 = vmatprep.subr.bf16.mxu0 %v1796_v16  ;;  %v1968_v8 = vpop.permute.xlu0 %1967 }
 0x438   : > { %2377 = vmatpush3.bf16.msra.mxu0 %v1796_v16 }
 0x439   : > { %2378 = vmatprep.subr.bf16.mxu0 %v1795_v57 }
 0x43c   : > { %2379 = vmatpush3.bf16.msra.mxu0 %v1795_v57 }
 0x43d   : > { %2380 = vmatprep.subr.bf16.mxu0 %v1794_v19 }
 0x440   : > { %2381 = vmatpush3.bf16.msra.mxu0 %v1794_v19 }
 0x441   : > { %2382 = vmatprep.subr.bf16.mxu0 %v1793_v25 }
 0x444   : > { %2383 = vmatpush3.bf16.msra.mxu0 %v1793_v25 }
 0x445   : > { %2384 = vmatprep.subr.bf16.mxu0 %v1792_v34 }
 0x448   : > { %2385 = vmatpush3.bf16.msra.mxu0 %v1792_v34 }
 0x449   : > { %2386 = vmatprep.subr.bf16.mxu0 %v3125_v48 }
 0x44c   : > { %2387 = vmatpush3.bf16.msra.mxu0 %v3125_v48  ;;  %v2524_v48 = vmov 0.0  }
 0x44d   : > { %2388 = vmatprep.subr.bf16.mxu0 %v3119_v38  ;;  %2398 = vmatprep.subr.bf16.mxu1 %v2524_v48 }
 0x44e   : > { %2406 = vmatprep.mubr.msk.bf16.mxu1 %vm2525_vm2, %v2524_v48 }
 0x450   : > { %2389 = vmatpush3.bf16.msra.mxu0 %v3119_v38 }
 0x453   : > { %2391 = vmatmul.mubr.bf16.vlgmr.msra.gmra.mxu0 %v2496_v4 }
 0x454   : > { %2394 = vmatprep.mubr.bf16.mxu0 %v2497_v29 }
 0x45b   : > { %2395 = vmatmul.mubr.bf16.gmra.mxu0 %v2498_v40 }
 0x513   : > { %v2392_v55 = vpop.f32.mrf.mxu0 }
 0x514   : > { %v1921_v33 = vadd.f32 %v2392_v55, %v1827_v62 }
 0x515   : > { %v1912_v26 = vpop.f32.mrf.mxu0 }
 0x516   : > { %v1945_v18 = vmul.f32 0.02, %v1921_v33  ;;  %v1913_v30 = vadd.f32 %v1912_v26, %v1817_v6 }
 0x517   : > { %v2393_v38 = vpop.f32.mrf.mxu0 }
 0x518   : > { %v1924_v2 = vadd.f32 %v2393_v38, %v1832_v43  ;;  %v1953_v39 = vmax.f32 %v1921_v33, %v1945_v18  ;;  %v1943_v16 = vmul.f32 0.02, %v1913_v30 }
 0x519   : > { %v1915_v54 = vpop.f32.mrf.mxu0 }
 0x51a   : > { %v1946_v10 = vmul.f32 0.02, %v1924_v2  ;;  %v1916_v5 = vadd.f32 %v1915_v54, %v1822_v50  ;;  %v1951_v1 = vmax.f32 %v1913_v30, %v1943_v16 }
 0x51b   : > { %v2396_v28 = vpop.f32.mrf.mxu0 }
 0x51c   : > { %v1937_v49 = vadd.f32 %v2396_v28, %v1847_v27  ;;  %v1954_v15 = vmax.f32 %v1924_v2, %v1946_v10  ;;  %v1944_v14 = vmul.f32 0.02, %v1916_v5 }
 0x51d   : > { %v1928_v60 = vpop.f32.mrf.mxu0 }
 0x51e   : > { %v1949_v45 = vmul.f32 0.02, %v1937_v49  ;;  %v1929_v9 = vadd.f32 %v1928_v60, %v1837_v24  ;;  %v1960_v13 = vpack.c.bf16 %v1954_v15, %v1953_v39  ;;  %v1952_v63 = vmax.f32 %v1916_v5, %v1944_v14 }
 0x51f   : > { %v2397_v47 = vpop.f32.mrf.mxu0 }
 0x520   : > { %v1940_v32 = vadd.f32 %v2397_v47, %v1852_v52  ;;  %v1957_v61 = vmax.f32 %v1937_v49, %v1949_v45  ;;  %v1947_v36 = vmul.f32 0.02, %v1929_v9  ;;  %v1959_v0 = vpack.c.bf16 %v1952_v63, %v1951_v1 }
 0x521   : > { %v1931_v31 = vpop.f32.mrf.mxu0 }
 0x522   : > { %v1950_v51 = vmul.f32 0.02, %v1940_v32  ;;  %v1932_v11 = vadd.f32 %v1931_v31, %v1842_v46  ;;  %v1955_v56 = vmax.f32 %v1929_v9, %v1947_v36 }
 0x524   : > { %v1958_v22 = vmax.f32 %v1940_v32, %v1950_v51  ;;  %v1948_v42 = vmul.f32 0.02, %v1932_v11 }
 0x526   : > { %v1962_v17 = vpack.c.bf16 %v1958_v22, %v1957_v61  ;;  %v1956_v7 = vmax.f32 %v1932_v11, %v1948_v42 }
 0x528   : > { %2399 = vmatpush3.bf16.msra.mxu1 %v1962_v17  ;;  %v1961_v3 = vpack.c.bf16 %v1956_v7, %v1955_v56 }
 0x529   : > { %2400 = vmatprep.subr.bf16.mxu1 %v2524_v48 }
 0x52c   : > { %2401 = vmatpush3.bf16.msra.mxu1 %v1961_v3 }
 0x52d   : > { %2402 = vmatprep.subr.bf16.mxu1 %v2524_v48 }
 0x530   : > { %2403 = vmatpush3.bf16.msra.mxu1 %v1960_v13 }
 0x531   : > { %2404 = vmatprep.subr.bf16.mxu1 %v2524_v48 }
 0x534   : > { %2405 = vmatpush3.bf16.msra.mxu1 %v1959_v0 }
 0x537   : > { %2407 = vmatmul.mubr.msk.bf16.vlgmr.msra.gmra.mxu1 %vm746_vm1, %v1963_v41 }
 0x5f7   : > { %v2007_v20 = vpop.f32.mrf.mxu1 }
 0x5f8   : > { %v2008_v57 = vadd.f32 %v2007_v20, %v1968_v8 }
 0x5f9   : > { %v2408_v44 = vpop.f32.mrf.mxu1 }
 0x5fa   : > { %2013 = vst [vmem:[%s442_s20] sm:$0x7] %v2008_v57 }
 0x5fb   : > { %v2010_v35 = vpop.f32.mrf.mxu1 }
 0x5fd   : > { %v2409_v53 = vpop.f32.mrf.mxu1 }
 0x5fe PF: > { %s22_s23 = sadd.s32 1, %s2521_s23   ;;  %s3184_s21 = smov %s2517_s22 }
 0x5ff   : > { %p19_p5 = scmp.ge.s32.totalorder %s22_s23, 4   ;;  %s3185_s22 = smov %s3187_s24 }
 0x601   :  { %21 = sbr.rel (!%p19_p5) target bundleno = 2 (0x2), region = 98 }

</bundles_post_ra>
